<compile_context>
chip_gen: v7x
topology: tpu7x:2x2x1
jax: 0.10.0
libtpu: 0.0.40
codegen_flags: <defaults>
</compile_context>

<pallas_src>
import numpy as np

import jax
import jax.numpy as jnp
from jax.experimental import pallas as pl
from jax.experimental.pallas import tpu as pltpu


# ----------------------------------------------------------------------------
# Embedded mini YOLOv3-style cfg (conv/bn/leaky, stride-2 conv, shortcut,
# route (single + concat), upsample, two yolo detection heads).
# ----------------------------------------------------------------------------
MINI_YOLO_CFG = """
[net]
height=16
width=16
channels=3

[convolutional]
batch_normalize=1
filters=8
size=3
stride=1
pad=1
activation=leaky

[convolutional]
batch_normalize=1
filters=16
size=3
stride=2
pad=1
activation=leaky

[convolutional]
batch_normalize=1
filters=8
size=1
stride=1
pad=1
activation=leaky

[convolutional]
batch_normalize=1
filters=16
size=3
stride=1
pad=1
activation=leaky

[shortcut]
from=-3
activation=linear

[convolutional]
batch_normalize=1
filters=32
size=3
stride=2
pad=1
activation=leaky

[convolutional]
filters=21
size=1
stride=1
pad=1
activation=linear

[yolo]
mask=0,1,2
anchors=10,13, 16,30, 33,23, 30,61, 62,45, 59,119
classes=2
num=6

[route]
layers=-3

[convolutional]
batch_normalize=1
filters=16
size=1
stride=1
pad=1
activation=leaky

[upsample]
stride=2

[route]
layers=-1, 4

[convolutional]
filters=21
size=1
stride=1
pad=1
activation=linear

[yolo]
mask=3,4,5
anchors=10,13, 16,30, 33,23, 30,61, 62,45, 59,119
classes=2
num=6
"""

LEAKY_SLOPE = 0.1


def parse_cfg_string(cfg):
    """Same semantics as parse_cfg, but from an in-memory string."""
    lines = [l.strip() for l in cfg.split("\n")]
    lines = [l for l in lines if len(l) > 0 and l[0] != "#"]
    block, blocks = {}, []
    for line in lines:
        if line[0] == "[":
            if len(block) != 0:
                blocks.append(block)
                block = {}
            block["type"] = line[1:-1].rstrip()
        else:
            k, v = line.split("=")
            block[k.rstrip()] = v.lstrip()
    blocks.append(block)
    return blocks


# ----------------------------------------------------------------------------
# Parameter init (mirrors create_modules bookkeeping, BN folded into W host-side).
# ----------------------------------------------------------------------------
def init_params(blocks, key):
    net_info = blocks[0]
    params = []
    prev_filters = int(net_info.get("channels", 3))
    output_filters = []
    filters = prev_filters
    for index, x in enumerate(blocks[1:]):
        p = {}
        t = x["type"]
        if t == "convolutional":
            bn = int(x.get("batch_normalize", 0))
            filters = int(x["filters"])
            k = int(x["size"])
            stride = int(x["stride"])
            pad = (k - 1) // 2 if int(x["pad"]) else 0
            key, k1, k2, k3, k4, k5, k6 = jax.random.split(key, 7)
            w = 0.1 * jax.random.normal(
                k1, (filters, prev_filters, k, k), jnp.float32)
            if bn:
                gamma = 1.0 + 0.1 * jax.random.normal(k2, (filters,), jnp.float32)
                beta = 0.1 * jax.random.normal(k3, (filters,), jnp.float32)
                mean = 0.1 * jax.random.normal(k4, (filters,), jnp.float32)
                var = jax.random.uniform(k5, (filters,), jnp.float32, 0.5, 1.5)
                sc = gamma / jnp.sqrt(var + 1e-5)
                bias = beta - mean * sc
            else:
                sc = jnp.ones((filters,), jnp.float32)
                bias = 0.1 * jax.random.normal(k6, (filters,), jnp.float32)
            p.update(w=w * sc[:, None, None, None],     # BN scale folded once
                     bias=bias, k=k, stride=stride, pad=pad,
                     leaky=(x["activation"] == "leaky"))
        elif t == "route":
            layers = [int(a) for a in x["layers"].split(",")]
            start = layers[0]
            end = layers[1] if len(layers) > 1 else 0
            if start > 0:
                start -= index
            if end > 0:
                end -= index
            if end < 0:
                filters = output_filters[index + start] + output_filters[index + end]
            else:
                filters = output_filters[index + start]
        # shortcut / upsample / yolo: no trainable params needed here
        params.append(p)
        prev_filters = filters
        output_filters.append(filters)
    return net_info, params


# ----------------------------------------------------------------------------
# Host-side constant builders (numpy): resample matrices + YOLO decode tables.
# ----------------------------------------------------------------------------
def _bilinear_1d(n_in, n_out):
    """align_corners=False bilinear weights, (n_in, n_out)."""
    w = np.zeros((n_in, n_out), np.float32)
    for o in range(n_out):
        src = (o + 0.5) * n_in / n_out - 0.5
        i0 = int(np.floor(src))
        f = src - i0
        lo = min(max(i0, 0), n_in - 1)
        hi = min(max(i0 + 1, 0), n_in - 1)
        w[lo, o] += 1.0 - f
        w[hi, o] += f
    return w


def make_upsample_matrix(batch, H, W, scale):
    """(B*H*W, B*Ho*Wo) bilinear mixing matrix; weights are k/16 -> exact bf16."""
    Ho, Wo = H * scale, W * scale
    uy = _bilinear_1d(H, Ho)
    ux = _bilinear_1d(W, Wo)
    blk = np.einsum("yY,xX->yxYX", uy, ux).reshape(H * W, Ho * Wo)
    U = np.zeros((batch * H * W, batch * Ho * Wo), np.float32)
    for b in range(batch):
        U[b * H * W:(b + 1) * H * W, b * Ho * Wo:(b + 1) * Ho * Wo] = blk
    return jnp.asarray(U, dtype=jnp.bfloat16)


def make_subsample_matrix(batch, H, W, Ho, Wo, s):
    """0/1 column-selection matrix: stride-s conv == same-res conv @ S."""
    S = np.zeros((batch * H * W, batch * Ho * Wo), np.float32)
    for b in range(batch):
        for yo in range(Ho):
            for xo in range(Wo):
                S[b * H * W + (s * yo) * W + s * xo,
                  b * Ho * Wo + yo * Wo + xo] = 1.0
    return jnp.asarray(S, dtype=jnp.bfloat16)


def make_yolo_consts(anchors, A, D, rows_p, batch, G, stride_px):
    """Precomputed decode tables so the in-kernel epilogue is select + FMA."""
    M = batch * G * G
    is_exp = np.zeros((rows_p, M), np.float32)
    mul = np.zeros((rows_p, 1), np.float32)
    add = np.zeros((rows_p, M), np.float32)
    cols = np.arange(M)
    cell = cols % (G * G)
    gx = (cell % G).astype(np.float32)
    gy = (cell // G).astype(np.float32)
    for a in range(A):
        for d in range(D):
            r = a * D + d
            if d in (2, 3):                 # w,h rows: exp(t) * anchor (pixels)
                is_exp[r, :] = 1.0
                mul[r, 0] = float(anchors[a][0] if d == 2 else anchors[a][1])
            elif d in (0, 1):               # x,y rows: (sigmoid(t)+grid)*stride
                mul[r, 0] = float(stride_px)
                add[r, :] = (gx if d == 0 else gy) * float(stride_px)
            else:                           # objectness / class rows: sigmoid
                mul[r, 0] = 1.0
    return jnp.asarray(is_exp), jnp.asarray(mul), jnp.asarray(add)


# ----------------------------------------------------------------------------
# pltpu.roll direction probe (tiny eager pallas_call, run once at setup) so the
# conv tap shifts are correct regardless of the rotate sign convention.
# ----------------------------------------------------------------------------
def _probe_roll_sign():
    def kern(x_ref, o_ref):
        o_ref[...] = pltpu.roll(x_ref[...], shift=1, axis=1)

    x = jnp.arange(128, dtype=jnp.float32).reshape(1, 128)
    y = pl.pallas_call(kern, out_shape=jax.ShapeDtypeStruct((1, 128), jnp.float32))(x)
    v = float(y[0, 0])
    if v == 127.0:
        return 1        # np.roll convention: out[i] = in[i - shift]
    if v == 1.0:
        return -1       # reversed convention: out[i] = in[i + shift]
    raise RuntimeError(f"unexpected pltpu.roll semantics probe value: {v}")


# ----------------------------------------------------------------------------
# In-kernel building blocks (traced inside the single fused kernel).
# ----------------------------------------------------------------------------
def _leaky(y):
    return jnp.where(y >= 0.0, y, LEAKY_SLOPE * y)


def _shift_cols(x, delta, roll_sign):
    """result[:, m] = x[:, (m + delta) mod M]; wraps are masked by the caller."""
    if delta == 0:
        return x
    M = x.shape[-1]
    return pltpu.roll(x, shift=((-roll_sign) * delta) % M, axis=1)


def _conv_block(step, chunks, c_refs, roll_sign):
    """conv + bias + LeakyReLU (+ stride-2 column-subsample matmul), fused.

    `chunks` is a list of (C_i, M) activation chunks: a 2-way route concat is
    represented as two chunks and the weight is pre-split per chunk, so the
    channel concat never materializes (split matmul)."""
    k, pad = step["k"], step["pad"]
    H, W = step["H"], step["W"]
    bias = c_refs[step["b_idx"]][...]                         # (Cout, 1) f32
    acc = None
    for w_idx, ch in zip(step["w_idx"], chunks):
        wref = c_refs[w_idx]
        if k == 1:
            part = jnp.dot(wref[...], ch.astype(jnp.bfloat16),
                           preferred_element_type=jnp.float32)
            acc = part if acc is None else acc + part
            continue
        # KxK taps assembled in-kernel: lane shift (XLU) + boundary mask, one
        # small MXU matmul per tap, f32 accumulation.  No im2col in HBM.
        cf = ch.astype(jnp.float32)
        Cc, M = cf.shape
        col = jax.lax.broadcasted_iota(jnp.int32, (Cc, M), 1)
        xc = col % W
        yc = (col // W) % H
        for ky in range(k):
            for kx in range(k):
                dy, dx = ky - pad, kx - pad
                tap = _shift_cols(cf, dy * W + dx, roll_sign)
                conds = []
                if dx < 0:
                    conds.append(xc >= -dx)
                elif dx > 0:
                    conds.append(xc < W - dx)
                if dy < 0:
                    conds.append(yc >= -dy)
                elif dy > 0:
                    conds.append(yc < H - dy)
                if conds:
                    m = conds[0]
                    for extra in conds[1:]:
                        m = jnp.logical_and(m, extra)
                    tap = jnp.where(m, tap, jnp.zeros_like(tap))
                part = jnp.dot(wref[ky * k + kx], tap.astype(jnp.bfloat16),
                               preferred_element_type=jnp.float32)
                acc = part if acc is None else acc + part
    y = acc + bias
    if step["leaky"]:
        y = _leaky(y)
    if step["S_idx"] is not None:
        # stride-2: pick every s-th column via a 0/1 selection matmul (MXU).
        y = jnp.dot(y.astype(jnp.bfloat16), c_refs[step["S_idx"]][...],
                    preferred_element_type=jnp.float32)
    return y


def _yolo_decode(y, is_exp, mul, add):
    sig = jax.nn.sigmoid(y)
    ex = jnp.exp(jnp.where(is_exp > 0.5, y, jnp.zeros_like(y)))  # clamp sigmoid rows
    val = jnp.where(is_exp > 0.5, ex, sig)
    return val * mul + add


# ----------------------------------------------------------------------------
# Network preparation: blocks + params -> static plan + constant tensors.
# ----------------------------------------------------------------------------
def prepare_network(blocks, params, batch):
    net_info = blocks[0]
    modules = blocks[1:]
    net_h = int(net_info["height"])
    in_c = int(net_info.get("channels", 3))
    in_cp = -(-in_c // 8) * 8                      # pad input channels to sublane tile
    H = int(net_info["height"])
    W = int(net_info["width"])

    consts = []

    def add_const(a):
        consts.append(a)
        return len(consts) - 1

    plan, out_info, out_shapes = [], [], []
    shape_of = {}                                  # idx -> (chunk_sizes, H, W)
    cur_chunks, cur_h, cur_w = [in_cp], H, W

    for i, m in enumerate(modules):
        t = m["type"]
        if t == "convolutional":
            p = params[i]
            k, s, pad, leaky = p["k"], p["stride"], p["pad"], p["leaky"]
            w = p["w"]                              # (Cout, Cin, k, k) f32, BN folded
            bias = p["bias"]
            cout = w.shape[0]
            cin_have = sum(cur_chunks)
            assert cin_have >= w.shape[1]
            if cin_have > w.shape[1]:               # zero-pad Cin (padded input chans)
                w = jnp.pad(w, ((0, 0), (0, cin_have - w.shape[1]), (0, 0), (0, 0)))
            next_is_yolo = i + 1 < len(modules) and modules[i + 1]["type"] == "yolo"
            cout_p = (-(-cout // 8) * 8) if next_is_yolo else cout
            if cout_p > cout:                       # pad detection-head rows (21 -> 24)
                w = jnp.pad(w, ((0, cout_p - cout), (0, 0), (0, 0), (0, 0)))
                bias = jnp.pad(bias, (0, cout_p - cout))
            w_idx, off = [], 0
            for cc in cur_chunks:                   # pre-split weights per input chunk
                wc = w[:, off:off + cc]
                off += cc
                if k == 1:
                    arr = wc[:, :, 0, 0]                                    # (Cout, cc)
                else:
                    arr = jnp.transpose(wc, (2, 3, 0, 1)).reshape(k * k, cout_p, cc)
                w_idx.append(add_const(arr.astype(jnp.bfloat16)))
            b_idx = add_const(bias.reshape(cout_p, 1).astype(jnp.float32))
            assert k == 1 or pad == (k - 1) // 2, "only 'same'-padded convs supported"
            ho = (cur_h + 2 * pad - k) // s + 1
            wo = (cur_w + 2 * pad - k) // s + 1
            s_idx = None
            if s != 1:
                assert s == 2 and k > 1
                s_idx = add_const(make_subsample_matrix(batch, cur_h, cur_w, ho, wo, s))
            plan.append(dict(type="conv", k=k, pad=pad, H=cur_h, W=cur_w,
                             leaky=leaky, w_idx=w_idx, b_idx=b_idx, S_idx=s_idx))
            cur_chunks, cur_h, cur_w = [cout_p], ho, wo
        elif t == "upsample":
            # create_modules hard-codes nn.Upsample(scale_factor=2, mode='bilinear')
            scale = 2
            u_idx = add_const(make_upsample_matrix(batch, cur_h, cur_w, scale))
            plan.append(dict(type="upsample", U_idx=u_idx))
            cur_h, cur_w = cur_h * scale, cur_w * scale
        elif t == "route":
            layers = [int(a) for a in m["layers"].split(",")]
            layers = [(l if l < 0 else l - i) for l in layers]
            abs_layers = [i + l for l in layers]
            plan.append(dict(type="route", layers=abs_layers))
            c0, h0, w0 = shape_of[abs_layers[0]]
            cur_chunks, cur_h, cur_w = list(c0), h0, w0
            if len(abs_layers) > 1:
                c1, h1, w1 = shape_of[abs_layers[1]]
                assert (h1, w1) == (h0, w0)
                cur_chunks = list(c0) + list(c1)
        elif t == "shortcut":
            frm = int(m["from"])
            plan.append(dict(type="shortcut", frm=frm))
            c0, h0, w0 = shape_of[i - 1]
            cur_chunks, cur_h, cur_w = list(c0), h0, w0
        elif t == "yolo":
            mask = [int(v) for v in m["mask"].split(",")]
            anc = [int(a) for a in m["anchors"].split(",")]
            anc = [(anc[j], anc[j + 1]) for j in range(0, len(anc), 2)]
            anchors = [anc[mm] for mm in mask]
            A = len(anchors)
            D = 5 + int(m["classes"])
            assert cur_h == cur_w
            G = cur_h
            stride_px = net_h // G
            rows_p = cur_chunks[0]
            assert len(cur_chunks) == 1 and rows_p >= A * D
            is_exp, mul, addv = make_yolo_consts(anchors, A, D, rows_p, batch, G,
                                                 stride_px)
            plan.append(dict(type="yolo", exp_idx=add_const(is_exp),
                             mul_idx=add_const(mul), add_idx=add_const(addv),
                             out_slot=len(out_info)))
            out_info.append(dict(A=A, D=D, G=G))
            out_shapes.append(
                jax.ShapeDtypeStruct((rows_p, batch * G * G), jnp.float32))
        else:
            raise ValueError(f"unsupported block type: {t}")
        shape_of[i] = (tuple(cur_chunks), cur_h, cur_w)

    return dict(plan=plan, consts=consts, out_info=out_info, out_shapes=out_shapes,
                in_c=in_c, in_cp=in_cp, H=H, W=W)


# ----------------------------------------------------------------------------
# Single fused pallas_call: Darknet.forward equivalent.
# ----------------------------------------------------------------------------
def build_kernel(plan, n_consts, roll_sign):
    def kernel(*refs):
        x_ref = refs[0]
        c_refs = refs[1:1 + n_consts]
        out_refs = refs[1 + n_consts:]
        outputs = {}
        x = [x_ref[...]]                               # chunk list of (C, M) values
        for i, step in enumerate(plan):
            t = step["type"]
            if t == "conv":
                x = [_conv_block(step, x, c_refs, roll_sign)]
            elif t == "upsample":
                U = c_refs[step["U_idx"]][...]
                x = [jnp.dot(c.astype(jnp.bfloat16), U,
                             preferred_element_type=jnp.float32) for c in x]
            elif t == "route":
                x = []
                for l in step["layers"]:
                    x = x + list(outputs[l])
            elif t == "shortcut":
                a = outputs[i - 1]
                b = outputs[i + step["frm"]]
                assert len(a) == len(b)
                x = [ca.astype(jnp.float32) + cb.astype(jnp.float32)
                     for ca, cb in zip(a, b)]
            elif t == "yolo":
                y = x[0]
                out_refs[step["out_slot"]][...] = _yolo_decode(
                    y, c_refs[step["exp_idx"]][...], c_refs[step["mul_idx"]][...],
                    c_refs[step["add_idx"]][...])
                # torch replaces x with the decoded detections here; nothing ever
                # routes from a yolo layer in darknet cfgs, so keep the raw logits.
            outputs[i] = x
    return kernel


def _full_spec(shape):
    nd = len(shape)
    return pl.BlockSpec(tuple(shape), lambda i, _nd=nd: (0,) * _nd)


def make_forward(blocks, params, batch):
    prep = prepare_network(blocks, params, batch)
    consts = prep["consts"]
    roll_sign = _probe_roll_sign()
    kernel = build_kernel(prep["plan"], len(consts), roll_sign)

    m0 = batch * prep["H"] * prep["W"]
    in_specs = [_full_spec((prep["in_cp"], m0))] + [_full_spec(c.shape) for c in consts]
    out_shapes = tuple(prep["out_shapes"])
    out_specs = tuple(_full_spec(s.shape) for s in out_shapes)

    call = pl.pallas_call(
        kernel,
        out_shape=out_shapes,
        grid=(1,),                      # whole network = one grid step, VMEM-resident
        in_specs=in_specs,
        out_specs=out_specs,
        compiler_params=pltpu.CompilerParams(dimension_semantics=("arbitrary",)),
    )

    out_info = prep["out_info"]
    in_c, in_cp = prep["in_c"], prep["in_cp"]
    H, W = prep["H"], prep["W"]

    def forward(x_nchw):
        b, c, h, w = x_nchw.shape
        assert (b, c, h, w) == (batch, in_c, H, W)
        # NCHW -> transposed (C, B*H*W): flattened spatial dim on the lane axis.
        xT = jnp.transpose(x_nchw, (1, 0, 2, 3)).reshape(c, b * h * w)
        if in_cp > c:
            xT = jnp.pad(xT, ((0, in_cp - c), (0, 0)))
        outs = call(xT.astype(jnp.bfloat16), *consts)
        if not isinstance(outs, (tuple, list)):
            outs = (outs,)
        dets = []
        for o, info in zip(outs, out_info):
            A, D, G = info["A"], info["D"], info["G"]
            o = o[:A * D].reshape(A, D, b, G * G)
            dets.append(jnp.transpose(o, (2, 3, 0, 1)).reshape(b, G * G * A, D))
        return dets[0] if len(dets) == 1 else jnp.concatenate(dets, axis=1)

    return forward


if __name__ == "__main__":
    key = jax.random.PRNGKey(0)
    kx, kp = jax.random.split(key)

    blocks = parse_cfg_string(MINI_YOLO_CFG)
    net_info, params = init_params(blocks, kp)

    batch = 2
    forward = make_forward(blocks, params, batch)

    # PyTorch-convention input: NCHW, batch=2, channels=3, 16x16
    x = jax.random.normal(kx, (batch, 3, 16, 16), jnp.float32)

    fwd = jax.jit(forward)
    det = jax.block_until_ready(fwd(x))

    # two detection scales: 4*4*3 + 8*8*3 = 240 boxes, 5 + 2 classes = 7 attrs
    assert det.shape == (2, 240, 7), det.shape
    assert bool(jnp.all(jnp.isfinite(det)))
    print("KERNEL_OK")
</pallas_src>

<mosaic_0001>
module attributes {stable_mosaic.version = 11 : i64} {
  func.func @kern(%arg0: memref<1x128xf32, #tpu.memory_space<vmem>>, %arg1: memref<1x128xf32, #tpu.memory_space<vmem>>) attributes {dimension_semantics = [], scalar_prefetch = 0 : i64, scratch_operands = 0 : i64, tpu.core_type = #tpu.core_type<tc>} {
    %c0 = arith.constant 0 : index
    %c0_0 = arith.constant 0 : index
    %0 = vector.load %arg0[%c0, %c0_0] : memref<1x128xf32, #tpu.memory_space<vmem>>, vector<1x128xf32>
    %c1_i32 = arith.constant 1 : i32
    %1 = tpu.dynamic_rotate %0 by %c1_i32 dim 1 : vector<1x128xf32>, i32 -> vector<1x128xf32>
    %c0_1 = arith.constant 0 : index
    %c0_2 = arith.constant 0 : index
    %2 = vector.load %arg1[%c0_1, %c0_2] : memref<1x128xf32, #tpu.memory_space<vmem>>, vector<1x128xf32>
    tpu.vector_store %arg1[%c0_1, %c0_2], %1 {strides = array<i32>} : memref<1x128xf32, #tpu.memory_space<vmem>>, vector<1x128xf32>,
    return
  }
}

</mosaic_0001>

<bundles_post_ra>
// kernel: tpu_custom_call.1
= control target key start
LH: loop header
LB: loop body
LE: loop exit
PB: predicated region body
PF: predicated region fallthrough
CT: control target
= control target key end

     0   :  { %6 = vsyncpa [#allocation3], 0  ;;  %s128_s0 = inlined_call_operand.hbm [shape: f32[1,128], index: 0, kind: input, shape index: {}]   ;;  %s129_s1 = inlined_call_operand.hbm [shape: f32[1,128], index: 1, kind: output, shape index: {}]  }
   0x1   :  { %7 = vsyncpa [#allocation4], 0  ;;  %s91_s6 = smov [#allocation2]   ;;  %s43_s10 = scalar_lea.hbm %s128_s0, 16 }
   0x2   :  { %s14_s7 = sshll.u32 %s91_s6, 4  ;;  %p44_p0 = scmp.ne.s32.totalorder %s128_s0, %s43_s10  ;;  %s15_s7 = int_to_ptr.vmem [resolvable:$true] %s14_s7 }
   0x3   :  { %p47_p1 = scmp.lt.u32.totalorder %s43_s10, %s128_s0 }
   0x5   :  { %p49_p2 = pnand %p47_p1, %p44_p0 }
   0x7   :  { %52 = shalt.err (!%p49_p2)
}
   0x8   :  { %s53_s15 = scalar_lea.vmem %s15_s7, 16  ;;  %s57_s16 = scalar_lea.vmem %s15_s7, 32 }
   0x9   :  { %p54_p3 = scmp.ne.s32.totalorder %s15_s7, %s53_s15  ;;  %p58_p4 = scmp.lt.s32.totalorder %s15_s7, %s15_s7 }
   0xa   :  { %p59_p5 = scmp.lt.s32.totalorder %s57_s16, %s53_s15 }
   0xc   :  { %p60_p6 = por %p59_p5, %p58_p4 }
   0xe   :  { %p61_p7 = pnand %p60_p6, %p54_p3 }
  0x10   :  { %64 = shalt.err (!%p61_p7)
}
  0x11   :  { %17 = dma.hbm_to_vmem [thread:$0]  %s128_s0, 16, %s15_s7, [#allocation3]  }
  0x12   :  { %87 = dma.done.wait [#allocation3], 16  }
  0x13   :  { %88 = vsyncadd [#allocation3], 4294967280  ;;  %v21_v0 = vld [vmem:[#allocation2] sm:$0x1]  ;;  %s92_s19 = smov 1   ;;  %s93_s20 = smov [#allocation5]  }
  0x14   :  { %22 = vrot.lane.b32.xlu0 %v21_v0, %s92_s19  ;;  %s31_s21 = sshll.u32 %s93_s20, 4  ;;  %s32_s21 = int_to_ptr.vmem [resolvable:$true] %s31_s21 }
  0x15   :  { %s65_s22 = scalar_lea.vmem %s32_s21, 16  ;;  %s69_s23 = scalar_lea.vmem %s32_s21, 32 }
  0x16   :  { %p66_p8 = scmp.ne.s32.totalorder %s32_s21, %s65_s22  ;;  %p70_p9 = scmp.lt.s32.totalorder %s32_s21, %s32_s21 }
  0x17   :  { %p71_p10 = scmp.lt.s32.totalorder %s69_s23, %s65_s22 }
  0x19   :  { %p72_p11 = por %p71_p10, %p70_p9 }
  0x1b   :  { %p73_p12 = pnand %p72_p11, %p66_p8 }
  0x86   :  { %v23_v1 = vpop.permute.xlu0 %22 }
  0x87   :  { %24 = vst [vmem:[#allocation5] sm:$0x1] %v23_v1 }
  0x88   :  { %76 = shalt.err (!%p73_p12)
}
  0x89   :  { %s77_s25 = scalar_lea.hbm %s129_s1, 16 }
  0x8a   :  { %p78_p13 = scmp.ne.s32.totalorder %s129_s1, %s77_s25  ;;  %p81_p0 = scmp.lt.u32.totalorder %s77_s25, %s129_s1 }
  0x8c   :  { %p83_p1 = pnand %p81_p0, %p78_p13 }
  0x8e   :  { %86 = shalt.err (!%p83_p1)
}
  0x8f   :  { %34 = dma.vmem_to_hbm [thread:$0]  %s32_s21, 16, %s129_s1, [#allocation4]  }
  0x90   :  { %89 = dma.done.wait [#allocation4], 16  }
  0x91   :  { %90 = vsyncadd [#allocation4], 4294967280 }
  0x92   :  { %38 = vsyncpa [#allocation3], 1 }
  0x93   :  { %39 = vsyncpa [#allocation4], 1 }

</bundles_post_ra>
